<compile_context>
chip_gen: v5e
topology: v5e:2x2
jax: 0.10.0
libtpu: 0.0.40
codegen_flags: <defaults>
</compile_context>

<pallas_src>
import functools

import jax
import jax.numpy as jnp
from jax.experimental import pallas as pl
from jax.experimental.pallas import tpu as pltpu

EPS = 1e-07
LOG_STD_MAX = 2.0
LOG_STD_MIN = -5.0
MEAN_MAX = 9.0
MEAN_MIN = -9.0

_LANE = 128
_SUBLANE = 8


def _round_up(x, m):
    return ((x + m - 1) // m) * m


def _softplus(z):
    # Numerically stable softplus: max(z, 0) + log1p(exp(-|z|)).
    return jnp.maximum(z, 0.0) + jnp.log1p(jnp.exp(-jnp.abs(z)))


def _actor_kernel(x_ref, w1_ref, b1_ref, w2_ref, b2_ref, wh_ref, bh_ref,
                  noise_ref, out_ref, *, num_action):
    A = num_action
    x = x_ref[...]

    # fc1 + ReLU
    h1 = jnp.dot(x, w1_ref[...], preferred_element_type=jnp.float32) + b1_ref[...]
    h1 = jnp.maximum(h1, 0.0)

    # fc2 + ReLU
    h2 = jnp.dot(h1, w2_ref[...], preferred_element_type=jnp.float32) + b2_ref[...]
    h2 = jnp.maximum(h2, 0.0)

    # fused mu / log_sigma heads: single [hidden, 2A] matmul
    heads = jnp.dot(h2, wh_ref[...], preferred_element_type=jnp.float32) + bh_ref[...]
    mu = heads[:, :A]
    log_sigma = jnp.clip(heads[:, A:2 * A], LOG_STD_MIN, LOG_STD_MAX)
    sigma = jnp.exp(log_sigma)

    # rsample: action_pre = mu + sigma * eps  (eps ~ N(0,1) supplied by host)
    eps = noise_ref[...]
    action_pre = mu + sigma * eps

    # Normal(mu, sigma).log_prob(action_pre) = -0.5*eps^2 - log(sigma) - 0.5*log(2*pi)
    log_prob = -0.5 * eps * eps - log_sigma - 0.5 * jnp.log(2.0 * jnp.pi)
    logp_pi = jnp.sum(log_prob, axis=-1, keepdims=True)

    # tanh-squash correction: 2 * (log(2) - a - softplus(-2a)), summed over action dim
    corr = 2.0 * (jnp.log(2.0) - action_pre - _softplus(-2.0 * action_pre))
    logp_pi = logp_pi - jnp.sum(corr, axis=-1, keepdims=True)

    action = jnp.tanh(action_pre)

    # Pack everything into one lane-dense [TB, 128] slab:
    #   cols [0:A)      action
    #   cols [A:2A)     mu
    #   cols [2A:3A)    sigma
    #   col  [3A]       logp_pi
    # The HBM-side output DMA is full 128-lane unmasked; the narrow masked
    # writes below only touch VMEM.
    out_ref[...] = jnp.zeros_like(out_ref)
    out_ref[:, 0:A] = action
    out_ref[:, A:2 * A] = mu
    out_ref[:, 2 * A:3 * A] = sigma
    out_ref[:, 3 * A:3 * A + 1] = logp_pi


def actor_forward(x, params, noise, *, block_batch=512):
    """Returns (action, logp_pi, (mu, sigma)) matching Actor.forward semantics."""
    batch, in_dim = x.shape
    num_hidden = params["w1"].shape[1]
    A = params["wmu"].shape[1]

    # Fuse the two head weight matrices into one [hidden, 2A] operand.
    wh = jnp.concatenate([params["wmu"], params["wsig"]], axis=1)
    bh = jnp.concatenate([params["bmu"], params["bsig"]], axis=1)

    # Batch tiling: TB rows per grid step (multiple of 8), batch padded to a
    # multiple of TB.  Per-step VMEM: ~TB*(in_dim + A + 128)*4B double-buffered
    # plus the (tiny) resident weights -> well under the 32 MiB scoped limit
    # even on v7x, so no vmem_limit_bytes override is needed.
    tb = min(block_batch, _round_up(batch, _SUBLANE))
    padded_batch = _round_up(batch, tb)
    if padded_batch != batch:
        x = jnp.pad(x, ((0, padded_batch - batch), (0, 0)))
        noise = jnp.pad(noise, ((0, padded_batch - batch), (0, 0)))

    packed_width = max(_LANE, _round_up(3 * A + 1, _LANE))

    row_map = lambda i: (i, 0)     # tiled by batch rows
    const_map = lambda i: (0, 0)   # weights/biases VMEM-resident across grid

    out = pl.pallas_call(
        functools.partial(_actor_kernel, num_action=A),
        out_shape=jax.ShapeDtypeStruct((padded_batch, packed_width), jnp.float32),
        grid=(padded_batch // tb,),
        in_specs=[
            pl.BlockSpec((tb, in_dim), row_map),                # x
            pl.BlockSpec((in_dim, num_hidden), const_map),      # w1
            pl.BlockSpec((1, num_hidden), const_map),           # b1
            pl.BlockSpec((num_hidden, num_hidden), const_map),  # w2
            pl.BlockSpec((1, num_hidden), const_map),           # b2
            pl.BlockSpec((num_hidden, 2 * A), const_map),       # fused head weights
            pl.BlockSpec((1, 2 * A), const_map),                # fused head bias
            pl.BlockSpec((tb, A), row_map),                     # noise
        ],
        out_specs=pl.BlockSpec((tb, packed_width), row_map),
        compiler_params=pltpu.CompilerParams(
            dimension_semantics=("parallel",),  # megacore sharding on v7x
        ),
    )(x, params["w1"], params["b1"], params["w2"], params["b2"], wh, bh, noise)

    out = out[:batch]
    action = out[:, 0:A]
    mu = out[:, A:2 * A]
    sigma = out[:, 2 * A:3 * A]
    logp_pi = out[:, 3 * A]  # torch .sum(axis=-1) (no keepdim) -> shape [batch]
    return action, logp_pi, (mu, sigma)


def init_params(key, num_state, num_action, num_agent, num_hidden):
    """Deterministic init; weights stored as [in, out] (transposed vs torch)."""
    in_dim = num_state + num_agent
    ks = jax.random.split(key, 8)

    def lin(kw, kb, fan_in, fan_out):
        bound = 1.0 / jnp.sqrt(fan_in)
        w = jax.random.uniform(kw, (fan_in, fan_out), jnp.float32, -bound, bound)
        b = jax.random.uniform(kb, (1, fan_out), jnp.float32, -bound, bound)
        return w, b

    w1, b1 = lin(ks[0], ks[1], in_dim, num_hidden)
    w2, b2 = lin(ks[2], ks[3], num_hidden, num_hidden)
    wmu, bmu = lin(ks[4], ks[5], num_hidden, num_action)
    wsig, bsig = lin(ks[6], ks[7], num_hidden, num_action)
    return dict(w1=w1, b1=b1, w2=w2, b2=b2,
                wmu=wmu, bmu=bmu, wsig=wsig, bsig=bsig)


def _reference_forward(x, params, noise):
    """Plain-JAX reference for sanity checking."""
    h1 = jnp.maximum(x @ params["w1"] + params["b1"], 0.0)
    h2 = jnp.maximum(h1 @ params["w2"] + params["b2"], 0.0)
    mu = h2 @ params["wmu"] + params["bmu"]
    log_sigma = jnp.clip(h2 @ params["wsig"] + params["bsig"], LOG_STD_MIN, LOG_STD_MAX)
    sigma = jnp.exp(log_sigma)
    a = mu + sigma * noise
    logp = jnp.sum(-0.5 * noise ** 2 - log_sigma - 0.5 * jnp.log(2 * jnp.pi), axis=-1)
    logp -= jnp.sum(2.0 * (jnp.log(2.0) - a - jax.nn.softplus(-2.0 * a)), axis=-1)
    return jnp.tanh(a), logp, (mu, sigma)


def _check(batch, num_state, num_agent, num_action, num_hidden, seed):
    key = jax.random.PRNGKey(seed)
    k_param, k_x, k_noise = jax.random.split(key, 3)
    params = init_params(k_param, num_state, num_action, num_agent, num_hidden)
    x = jax.random.normal(k_x, (batch, num_state + num_agent), jnp.float32)
    # Reparameterization noise for rsample (generated on host, consumed in-kernel).
    noise = jax.random.normal(k_noise, (batch, num_action), jnp.float32)

    action, logp_pi, (mu, sigma) = actor_forward(x, params, noise)
    jax.block_until_ready((action, logp_pi, mu, sigma))

    a_ref, lp_ref, (mu_ref, sig_ref) = _reference_forward(x, params, noise)
    assert action.shape == (batch, num_action) and logp_pi.shape == (batch,)
    assert jnp.allclose(action, a_ref, atol=1e-5)
    assert jnp.allclose(logp_pi, lp_ref, atol=1e-4)
    assert jnp.allclose(mu, mu_ref, atol=1e-5)
    assert jnp.allclose(sigma, sig_ref, atol=1e-5)


if __name__ == "__main__":
    # Small shapes consistent with the module's constructor.
    _check(batch=2, num_state=6, num_agent=2, num_action=4, num_hidden=32, seed=0)
    # Larger batch to exercise the batch grid (multiple 512-row steps) + padding.
    _check(batch=600, num_state=6, num_agent=2, num_action=4, num_hidden=32, seed=0)
    print("KERNEL_OK")
</pallas_src>

<mosaic_0001>
module attributes {stable_mosaic.version = 11 : i64} {
  func.func @_actor_kernel(%arg0: i32, %arg1: memref<8x8xf32, #tpu.memory_space<vmem>>, %arg2: memref<8x32xf32, #tpu.memory_space<vmem>>, %arg3: memref<1x32xf32, #tpu.memory_space<vmem>>, %arg4: memref<32x32xf32, #tpu.memory_space<vmem>>, %arg5: memref<1x32xf32, #tpu.memory_space<vmem>>, %arg6: memref<32x8xf32, #tpu.memory_space<vmem>>, %arg7: memref<1x8xf32, #tpu.memory_space<vmem>>, %arg8: memref<8x4xf32, #tpu.memory_space<vmem>>, %arg9: memref<8x128xf32, #tpu.memory_space<vmem>>) attributes {dimension_semantics = [#tpu.dimension_semantics<parallel>], iteration_bounds = array<i64: 1>, scalar_prefetch = 0 : i64, scratch_operands = 0 : i64, tpu.core_type = #tpu.core_type<tc>, window_params = [{transform_indices = @transform_0, window_bounds = array<i64: 8, 8>}, {pipeline_mode = #tpu.pipeline_mode<synchronous>, transform_indices = @transform_1, window_bounds = array<i64: 8, 32>}, {pipeline_mode = #tpu.pipeline_mode<synchronous>, transform_indices = @transform_2, window_bounds = array<i64: 1, 32>}, {pipeline_mode = #tpu.pipeline_mode<synchronous>, transform_indices = @transform_3, window_bounds = array<i64: 32, 32>}, {pipeline_mode = #tpu.pipeline_mode<synchronous>, transform_indices = @transform_4, window_bounds = array<i64: 1, 32>}, {pipeline_mode = #tpu.pipeline_mode<synchronous>, transform_indices = @transform_5, window_bounds = array<i64: 32, 8>}, {pipeline_mode = #tpu.pipeline_mode<synchronous>, transform_indices = @transform_6, window_bounds = array<i64: 1, 8>}, {transform_indices = @transform_7, window_bounds = array<i64: 8, 4>}, {transform_indices = @transform_8, window_bounds = array<i64: 8, 128>}]} {
    %c0 = arith.constant 0 : index
    %c0_0 = arith.constant 0 : index
    %0 = vector.load %arg1[%c0, %c0_0] : memref<8x8xf32, #tpu.memory_space<vmem>>, vector<8x8xf32>
    %c0_1 = arith.constant 0 : index
    %c0_2 = arith.constant 0 : index
    %1 = vector.load %arg2[%c0_1, %c0_2] : memref<8x32xf32, #tpu.memory_space<vmem>>, vector<8x32xf32>
    %cst = arith.constant dense<0.000000e+00> : vector<8x32xf32>
    %2 = tpu.matmul %0, %1, %cst {dimension_numbers = #tpu.dot_dimension_numbers<[1], [0], [0], [1], [0, 0, 1, 1], [], []>} : vector<8x8xf32>, vector<8x32xf32>, vector<8x32xf32> -> vector<8x32xf32>
    %c0_3 = arith.constant 0 : index
    %c0_4 = arith.constant 0 : index
    %3 = vector.load %arg3[%c0_3, %c0_4] : memref<1x32xf32, #tpu.memory_space<vmem>>, vector<1x32xf32>
    %4 = vector.broadcast %3 : vector<1x32xf32> to vector<8x32xf32>
    %5 = arith.addf %2, %4 : vector<8x32xf32>
    %cst_5 = arith.constant 0.000000e+00 : f32
    %6 = vector.broadcast %cst_5 : f32 to vector<8x32xf32>
    %7 = arith.maximumf %5, %6 : vector<8x32xf32>
    %c0_6 = arith.constant 0 : index
    %c0_7 = arith.constant 0 : index
    %8 = vector.load %arg4[%c0_6, %c0_7] : memref<32x32xf32, #tpu.memory_space<vmem>>, vector<32x32xf32>
    %cst_8 = arith.constant dense<0.000000e+00> : vector<8x32xf32>
    %9 = tpu.matmul %7, %8, %cst_8 {dimension_numbers = #tpu.dot_dimension_numbers<[1], [0], [0], [1], [0, 0, 1, 1], [], []>} : vector<8x32xf32>, vector<32x32xf32>, vector<8x32xf32> -> vector<8x32xf32>
    %c0_9 = arith.constant 0 : index
    %c0_10 = arith.constant 0 : index
    %10 = vector.load %arg5[%c0_9, %c0_10] : memref<1x32xf32, #tpu.memory_space<vmem>>, vector<1x32xf32>
    %11 = vector.broadcast %10 : vector<1x32xf32> to vector<8x32xf32>
    %12 = arith.addf %9, %11 : vector<8x32xf32>
    %cst_11 = arith.constant 0.000000e+00 : f32
    %13 = vector.broadcast %cst_11 : f32 to vector<8x32xf32>
    %14 = arith.maximumf %12, %13 : vector<8x32xf32>
    %c0_12 = arith.constant 0 : index
    %c0_13 = arith.constant 0 : index
    %15 = vector.load %arg6[%c0_12, %c0_13] : memref<32x8xf32, #tpu.memory_space<vmem>>, vector<32x8xf32>
    %cst_14 = arith.constant dense<0.000000e+00> : vector<8x8xf32>
    %16 = tpu.matmul %14, %15, %cst_14 {dimension_numbers = #tpu.dot_dimension_numbers<[1], [0], [0], [1], [0, 0, 1, 1], [], []>} : vector<8x32xf32>, vector<32x8xf32>, vector<8x8xf32> -> vector<8x8xf32>
    %c0_15 = arith.constant 0 : index
    %c0_16 = arith.constant 0 : index
    %17 = vector.load %arg7[%c0_15, %c0_16] : memref<1x8xf32, #tpu.memory_space<vmem>>, vector<1x8xf32>
    %18 = vector.broadcast %17 : vector<1x8xf32> to vector<8x8xf32>
    %19 = arith.addf %16, %18 : vector<8x8xf32>
    %20 = vector.extract_strided_slice %19 {offsets = [0, 0], sizes = [8, 4], strides = [1, 1]} : vector<8x8xf32> to vector<8x4xf32>
    %21 = vector.extract_strided_slice %19 {offsets = [0, 4], sizes = [8, 4], strides = [1, 1]} : vector<8x8xf32> to vector<8x4xf32>
    %cst_17 = arith.constant -5.000000e+00 : f32
    %cst_18 = arith.constant 2.000000e+00 : f32
    %22 = vector.broadcast %cst_17 : f32 to vector<8x4xf32>
    %23 = arith.maximumf %22, %21 : vector<8x4xf32>
    %24 = vector.broadcast %cst_18 : f32 to vector<8x4xf32>
    %25 = arith.minimumf %24, %23 : vector<8x4xf32>
    %26 = math.exp %25 : vector<8x4xf32>
    %c0_19 = arith.constant 0 : index
    %c0_20 = arith.constant 0 : index
    %27 = vector.load %arg8[%c0_19, %c0_20] : memref<8x4xf32, #tpu.memory_space<vmem>>, vector<8x4xf32>
    %28 = arith.mulf %26, %27 : vector<8x4xf32>
    %29 = arith.addf %20, %28 : vector<8x4xf32>
    %cst_21 = arith.constant -5.000000e-01 : f32
    %30 = vector.broadcast %cst_21 : f32 to vector<8x4xf32>
    %31 = arith.mulf %30, %27 : vector<8x4xf32>
    %32 = arith.mulf %31, %27 : vector<8x4xf32>
    %33 = arith.subf %32, %25 : vector<8x4xf32>
    %cst_22 = arith.constant 6.28318548 : f32
    %34 = math.log %cst_22 : f32
    %cst_23 = arith.constant 5.000000e-01 : f32
    %35 = arith.mulf %cst_23, %34 : f32
    %36 = vector.broadcast %35 : f32 to vector<8x4xf32>
    %37 = arith.subf %33, %36 : vector<8x4xf32>
    %cst_24 = arith.constant dense<0.000000e+00> : vector<8xf32>
    %38 = vector.multi_reduction <add>, %37, %cst_24 [1] : vector<8x4xf32> to vector<8xf32>
    %39 = vector.shape_cast %38 : vector<8xf32> to vector<8x1xf32>
    %cst_25 = arith.constant 2.000000e+00 : f32
    %40 = math.log %cst_25 : f32
    %41 = vector.broadcast %40 : f32 to vector<8x4xf32>
    %42 = arith.subf %41, %29 : vector<8x4xf32>
    %cst_26 = arith.constant -2.000000e+00 : f32
    %43 = vector.broadcast %cst_26 : f32 to vector<8x4xf32>
    %44 = arith.mulf %43, %29 : vector<8x4xf32>
    %cst_27 = arith.constant 0.000000e+00 : f32
    %45 = vector.broadcast %cst_27 : f32 to vector<8x4xf32>
    %46 = arith.maximumf %44, %45 : vector<8x4xf32>
    %47 = math.absf %44 : vector<8x4xf32>
    %cst_28 = arith.constant 0.000000e+00 : f32
    %48 = vector.broadcast %cst_28 : f32 to vector<8x4xf32>
    %49 = arith.subf %48, %47 : vector<8x4xf32>
    %50 = math.exp %49 : vector<8x4xf32>
    %51 = math.log1p %50 : vector<8x4xf32>
    %52 = arith.addf %46, %51 : vector<8x4xf32>
    %53 = arith.subf %42, %52 : vector<8x4xf32>
    %cst_29 = arith.constant 2.000000e+00 : f32
    %54 = vector.broadcast %cst_29 : f32 to vector<8x4xf32>
    %55 = arith.mulf %54, %53 : vector<8x4xf32>
    %cst_30 = arith.constant dense<0.000000e+00> : vector<8xf32>
    %56 = vector.multi_reduction <add>, %55, %cst_30 [1] : vector<8x4xf32> to vector<8xf32>
    %57 = vector.shape_cast %56 : vector<8xf32> to vector<8x1xf32>
    %58 = arith.subf %39, %57 : vector<8x1xf32>
    %59 = math.tanh %29 : vector<8x4xf32>
    %cst_31 = arith.constant 0.000000e+00 : f32
    %60 = vector.broadcast %cst_31 : f32 to vector<8x128xf32>
    %c0_32 = arith.constant 0 : index
    %c0_33 = arith.constant 0 : index
    %61 = vector.load %arg9[%c0_32, %c0_33] : memref<8x128xf32, #tpu.memory_space<vmem>>, vector<8x128xf32>
    tpu.vector_store %arg9[%c0_32, %c0_33], %60 {strides = array<i32>} : memref<8x128xf32, #tpu.memory_space<vmem>>, vector<8x128xf32>,
    %c0_34 = arith.constant 0 : index
    %c0_35 = arith.constant 0 : index
    %62 = vector.load %arg9[%c0_34, %c0_35] : memref<8x128xf32, #tpu.memory_space<vmem>>, vector<8x4xf32>
    tpu.vector_store %arg9[%c0_34, %c0_35], %59 {strides = array<i32>} : memref<8x128xf32, #tpu.memory_space<vmem>>, vector<8x4xf32>,
    %c0_36 = arith.constant 0 : index
    %c4 = arith.constant 4 : index
    %63 = vector.load %arg9[%c0_36, %c4] : memref<8x128xf32, #tpu.memory_space<vmem>>, vector<8x4xf32>
    tpu.vector_store %arg9[%c0_36, %c4], %20 {strides = array<i32>} : memref<8x128xf32, #tpu.memory_space<vmem>>, vector<8x4xf32>,
    %c0_37 = arith.constant 0 : index
    %c8 = arith.constant 8 : index
    %64 = vector.load %arg9[%c0_37, %c8] : memref<8x128xf32, #tpu.memory_space<vmem>>, vector<8x4xf32>
    tpu.vector_store %arg9[%c0_37, %c8], %26 {strides = array<i32>} : memref<8x128xf32, #tpu.memory_space<vmem>>, vector<8x4xf32>,
    %c0_38 = arith.constant 0 : index
    %c12 = arith.constant 12 : index
    %65 = vector.load %arg9[%c0_38, %c12] : memref<8x128xf32, #tpu.memory_space<vmem>>, vector<8x1xf32>
    tpu.vector_store %arg9[%c0_38, %c12], %58 {strides = array<i32>} : memref<8x128xf32, #tpu.memory_space<vmem>>, vector<8x1xf32>,
    return
  }
  func.func @transform_0(%arg0: i32) -> (i32, i32) {
    %c0_i32 = arith.constant 0 : i32
    %c0_i32_0 = arith.constant 0 : i32
    return %arg0, %c0_i32 : i32, i32
  }
  func.func @transform_1(%arg0: i32) -> (i32, i32) {
    %c0_i32 = arith.constant 0 : i32
    %c0_i32_0 = arith.constant 0 : i32
    %c0_i32_1 = arith.constant 0 : i32
    return %c0_i32, %c0_i32_0 : i32, i32
  }
  func.func @transform_2(%arg0: i32) -> (i32, i32) {
    %c0_i32 = arith.constant 0 : i32
    %c0_i32_0 = arith.constant 0 : i32
    %c0_i32_1 = arith.constant 0 : i32
    return %c0_i32, %c0_i32_0 : i32, i32
  }
  func.func @transform_3(%arg0: i32) -> (i32, i32) {
    %c0_i32 = arith.constant 0 : i32
    %c0_i32_0 = arith.constant 0 : i32
    %c0_i32_1 = arith.constant 0 : i32
    return %c0_i32, %c0_i32_0 : i32, i32
  }
  func.func @transform_4(%arg0: i32) -> (i32, i32) {
    %c0_i32 = arith.constant 0 : i32
    %c0_i32_0 = arith.constant 0 : i32
    %c0_i32_1 = arith.constant 0 : i32
    return %c0_i32, %c0_i32_0 : i32, i32
  }
  func.func @transform_5(%arg0: i32) -> (i32, i32) {
    %c0_i32 = arith.constant 0 : i32
    %c0_i32_0 = arith.constant 0 : i32
    %c0_i32_1 = arith.constant 0 : i32
    return %c0_i32, %c0_i32_0 : i32, i32
  }
  func.func @transform_6(%arg0: i32) -> (i32, i32) {
    %c0_i32 = arith.constant 0 : i32
    %c0_i32_0 = arith.constant 0 : i32
    %c0_i32_1 = arith.constant 0 : i32
    return %c0_i32, %c0_i32_0 : i32, i32
  }
  func.func @transform_7(%arg0: i32) -> (i32, i32) {
    %c0_i32 = arith.constant 0 : i32
    %c0_i32_0 = arith.constant 0 : i32
    return %arg0, %c0_i32 : i32, i32
  }
  func.func @transform_8(%arg0: i32) -> (i32, i32) {
    %c0_i32 = arith.constant 0 : i32
    %c0_i32_0 = arith.constant 0 : i32
    return %arg0, %c0_i32 : i32, i32
  }
}

</mosaic_0001>

<bundles_post_ra>
// kernel: tpu_custom_call.1
= control target key start
LH: loop header
LB: loop body
LE: loop exit
PB: predicated region body
PF: predicated region fallthrough
CT: control target
= control target key end

     0   :  { %13 = vsyncpa [#allocation3], 0  ;;  %s398_s0 = inlined_call_operand.vmem [shape: f32[8,8], index: 0, kind: input, shape index: {}]   ;;  %s399_s1 = inlined_call_operand.hbm [shape: f32[8,32], index: 1, kind: input, shape index: {}]   ;;  %s400_s2 = inlined_call_operand.vmem [shape: f32[1,32], index: 2, kind: input, shape index: {}]   ;;  %s401_s3 = inlined_call_operand.vmem [shape: f32[32,32], index: 3, kind: input, shape index: {}]   ;;  %s402_s4 = inlined_call_operand.vmem [shape: f32[1,32], index: 4, kind: input, shape index: {}]   ;;  %s403_s5 = inlined_call_operand.vmem [shape: f32[32,8], index: 5, kind: input, shape index: {}]   ;;  %s404_s6 = inlined_call_operand.vmem [shape: f32[1,8], index: 6, kind: input, shape index: {}]   ;;  %s405_s7 = inlined_call_operand.vmem [shape: f32[8,4], index: 7, kind: input, shape index: {}]   ;;  %s406_s8 = inlined_call_operand.hbm [shape: f32[8,128], index: 8, kind: output, shape index: {}]  }
   0x1   :  { %14 = vsyncpa [#allocation4], 0  ;;  %s22_s29 = sshll.u32 %s399_s1, 4  ;;  %s295_s30 = smov [#allocation2]   ;;  %s23_s29 = int_to_ptr.hbm [resolvable:$true] %s22_s29 }
   0x2   :  { %s24_s9 = sshll.u32 %s295_s30, 4  ;;  %s25_s9 = int_to_ptr.vmem [resolvable:$true] %s24_s9 }
   0x3   :  { %27 = dma.hbm_to_vmem [thread:$0]  %s23_s29, 128, %s25_s9, [#allocation3]  }
   0x4   :  { %291 = dma.done.wait [#allocation3], 128  }
   0x5   :  { %292 = vsyncadd [#allocation3], 4294967168  ;;  %vm50_vm0 = vcmask 64512   ;;  %v45_v0 = vld [vmem:[#allocation2] sm:$0xff]  ;;  %v78_v2 = vld [vmem:[%s401_s3 + $0x18] sm:$0xff]  ;;  %vm83_vm1 = vcmask 261120  }
   0x6   :  { %v44_v1 = vld [vmem:[%s398_s0] sm:$0xff]  ;;  %69 = vmatpush.msra.mxu0 %v45_v0  ;;  %99 = vmatpush.msra.mxu1 %v78_v2  ;;  %v77_v3 = vld [vmem:[%s401_s3 + $0x10] sm:$0xff]  ;;  %v76_v4 = vld [vmem:[%s401_s3 + $0x8] sm:$0xff]  ;;  %s296_s28 = smov 4   ;;  %v298_v28 = vmov 0.0   ;;  %vm162_vm2 = vcmask 31744  }
   0x7   :  { %223 = vmatmul.msk.f32.vlgmr.msra.gmra.mxu0 %vm50_vm0, %v44_v1  ;;  %v75_v5 = vld [vmem:[%s401_s3] sm:$0xff]  ;;  %v111_v6 = vld [vmem:[%s403_s5 + $0x18] sm:$0xff]  ;;  %v110_v11 = vld [vmem:[%s403_s5 + $0x10] sm:$0xff]  ;;  %190 = vst [vmem:[#allocation5] sm:$0xff] %v298_v28  ;;  %vm196_vm4 = vcmask 64544   ;;  %s213_s12 = sshll.u32 %s406_s8, 4  ;;  %s214_s12 = int_to_ptr.hbm [resolvable:$true] %s213_s12 }
   0x8   :  { %100 = vmatpush.msra.mxu1 %v77_v3  ;;  %131 = vmatpush.msra.mxu2 %v111_v6  ;;  %v232_v7 = vld [vmem:[%s400_s2] ss:$0 sm:$0xff]  ;;  %v109_v12 = vld [vmem:[%s403_s5 + $0x8] sm:$0xff]  ;;  %vm202_vm5 = vcmask 97344   ;;  %vm204_vm6 = vcmask 105568  }
   0x9   :  { %v108_v13 = vld [vmem:[%s403_s5] sm:$0xff]  ;;  %s297_s5 = smov 124  }
   0xa   :  { %101 = vmatpush.msra.mxu1 %v76_v4  ;;  %132 = vmatpush.msra.mxu2 %v110_v11  ;;  %v143_v14 = vld [vmem:[%s405_s7] sm:$0xff] }
   0xb   :  { %145 = vrot.lane.b32.xlu0 %v143_v14, %s296_s28  ;;  %v233_v15 = vld [vmem:[%s402_s4] ss:$0 sm:$0xff]  ;;  %v154_v29 = vmul.f32 -0.5, %v143_v14  ;;  %s299_s4 = smov [#allocation5]  }
   0xc   :  { %102 = vmatpush.msra.mxu1 %v75_v5  ;;  %133 = vmatpush.msra.mxu2 %v109_v12  ;;  %v234_v19 = vld [vmem:[%s404_s6] ss:$0 sm:$0xff]  ;;  %s211_s6 = sshll.u32 %s299_s4, 4  ;;  %s212_s6 = int_to_ptr.vmem [resolvable:$true] %s211_s6 }
   0xd   :  { %v155_v30 = vmul.f32 %v154_v29, %v143_v14 }
   0xe   :  { %134 = vmatpush.msra.mxu2 %v108_v13 }
  0x7d   :  { %v146_v25 = vpop.permute.xlu0 %145 }
  0x84   :  { %v71_v8 = vpop.f32.mrf.mxu0 }
  0x85   :  { %v72_v9 = vadd.f32 %v232_v7, %v71_v8 }
  0x87   :  { %v74_v10 = vmax.f32 %v72_v9, 0.0 }
  0x89   :  { %224 = vmatmul.msk.f32.vlgmr.msra.gmra.mxu1 %vm83_vm1, %v74_v10 }
 0x106   :  { %v104_v16 = vpop.f32.mrf.mxu1 }
 0x107   :  { %v105_v17 = vadd.f32 %v233_v15, %v104_v16 }
 0x109   :  { %v107_v18 = vmax.f32 %v105_v17, 0.0 }
 0x10b   :  { %225 = vmatmul.msk.f32.vlgmr.msra.gmra.mxu2 %vm83_vm1, %v107_v18 }
 0x18e   :  { %v136_v20 = vpop.f32.mrf.mxu2 }
 0x18f   :  { %v137_v21 = vadd.f32 %v234_v19, %v136_v20 }
 0x191   :  { %v139_v22 = vmax.f32 %v137_v21, -5.0 }
 0x193   :  { %v140_v23 = vmin.f32 %v139_v22, 2.0 }
 0x195   :  { %157 = vrot.lane.b32.xlu1 %v140_v23, %s297_s5  ;;  %v141_v24 = vmul.f32 1.442695, %v140_v23 }
 0x197   :  { %235 = vpow2.f32 %v141_v24 }
 0x19d   :  { %v236_v26 = vpop.eup %235 }
 0x19e   :  { %v148_v27 = vmul.f32 %v236_v26, %v146_v25 }
 0x1a0   :  { %150 = vrot.lane.b32.xlu0 %v148_v27, %s297_s5 }
 0x1a8   :  { %199 = vrot.lane.b32.xlu0 %v236_v26, %s296_s28 }
 0x207   :  { %v158_v31 = vpop.permute.xlu1 %157 }
 0x208   :  { %v160_v32 = vsub.f32 %v155_v30, %v158_v31 }
 0x20a   :  { %v226_v33 = vadd.f32 -0.9189385, %v160_v32 }
 0x20c   :  { %v163_v34 = vsel %vm162_vm2, %v226_v33, 0.0 }
 0x20d   :  { %164 = vadd.xlane.f32.xlu1 %v163_v34 }
 0x212   :  { %v151_v35 = vpop.permute.xlu0 %150 }
 0x213   :  { %v153_v36 = vadd.f32 %v151_v35, %v137_v21 }
 0x215   :  { %v167_v37 = vmul.f32 -2.0, %v153_v36  ;;  %237 = vtanh.f32 %v153_v36  ;;  %v166_v52 = vsub.f32 0.6931472, %v153_v36 }
 0x217   :  { %v169_v38 = vand.u32 2147483647, %v167_v37  ;;  %v168_v50 = vmax.f32 %v167_v37, 0.0 }
 0x219   :  { %v170_v39 = vsub.f32 0.0, %v169_v38 }
 0x21a   :  { %v200_v60 = vpop.permute.xlu0 %199 }
 0x21b   :  { %v238_v40 = vpop.eup %237  ;;  %v171_v41 = vmul.f32 1.442695, %v170_v39 }
 0x21c   :  { %191 = vst.msk [vmem:[#allocation5] sm:$0xff] %vm162_vm2, %v238_v40 }
 0x21d   :  { %239 = vpow2.f32 %v171_v41 }
 0x223   :  { %v240_v42 = vpop.eup %239 }
 0x224   :  { %v173_v43 = vadd.f32 1.0, %v240_v42  ;;  %v176_v44 = vmul.f32 -0.5, %v240_v42  ;;  %v179_v46 = vand.u32 2147483647, %v240_v42 }
 0x226   :  { %241 = vlog2.f32 %v173_v43  ;;  %v177_v45 = vadd.f32 1.0, %v176_v44  ;;  %vm180_vm3 = vcmp.lt.f32.partialorder %v179_v46, 0.0004427343 }
 0x228   :  { %v178_v49 = vmul.f32 %v240_v42, %v177_v45 }
 0x22c   :  { %v242_v47 = vpop.eup %241 }
 0x22d   :  { %v175_v48 = vmul.f32 0.6931472, %v242_v47 }
 0x22f   :  { %v181_v51 = vsel %vm180_vm3, %v178_v49, %v175_v48 }
 0x230   :  { %v182_v53 = vadd.f32 %v181_v51, %v168_v50 }
 0x232   :  { %v183_v54 = vsub.f32 %v166_v52, %v182_v53 }
 0x234   :  { %v184_v55 = vmul.f32 2.0, %v183_v54 }
 0x236   :  { %v185_v56 = vsel %vm162_vm2, %v184_v55, 0.0 }
 0x237   :  { %186 = vadd.xlane.f32.xlu2 %v185_v56 }
 0x24f   :  { %193 = vrot.lane.b32.xlu2 %v137_v21, %s296_s28 }
 0x280   :  { %v165_v58 = vpop.xlane.xlu1 %164 }
 0x2aa   :  { %v187_v57 = vpop.xlane.xlu2 %186 }
 0x2ab   :  { %v188_v61 = vsub.f32 %v165_v58, %v187_v57 }
 0x2b2   :  { %v194_v59 = vpop.permute.xlu2 %193 }
 0x2b3   :  { %197 = vst.msk [vmem:[#allocation5] sm:$0xff] %vm196_vm4, %v194_v59 }
 0x2b4   :  { %203 = vst.msk [vmem:[#allocation5] sm:$0xff] %vm202_vm5, %v200_v60 }
 0x2b5   :  { %205 = vst.msk [vmem:[#allocation5] sm:$0xff] %vm204_vm6, %v188_v61 }
 0x2b6   :  { %216 = dma.vmem_to_hbm [thread:$0]  %s212_s6, 128, %s214_s12, [#allocation4]  }
 0x2b7   :  { %293 = dma.done.wait [#allocation4], 128  }
 0x2b8   :  { %294 = vsyncadd [#allocation4], 4294967168 }
 0x2b9   :  { %221 = vsyncpa [#allocation3], 1 }
 0x2ba   :  { %222 = vsyncpa [#allocation4], 1 }

</bundles_post_ra>
